<compile_context>
chip_gen: v7x
topology: tpu7x:2x2x1
jax: 0.10.0
libtpu: 0.0.40
codegen_flags: <defaults>
</compile_context>

<pallas_src>
import jax
import jax.numpy as jnp
from jax import lax
from jax.experimental import pallas as pl
from jax.experimental.pallas import tpu as pltpu

# ---- model hyperparameters (small, consistent with the module's __init__) ----
N_CLASS = 32      # vocab size (n_class)
EMB_SIZE = 16     # emb_size
N_HIDDEN = 32     # n_hidden
BATCH = 8
SEQ = 5


def _lstm_kernel(xemb_ref, h0_ref, c0_ref, wu_ref, bg_ref, wv_ref,
                 wout_ref, bout_ref, out_ref, xu_ref):
    SB, _ = xemb_ref.shape            # [S*B, E]
    B, H4 = h0_ref.shape              # H4 = 4 * hidden
    H = H4 // 4
    S = SB // B

    # ---- preamble: input projection for ALL timesteps in ONE matmul (off the
    # serial critical path); gate bias folded in here. ----
    xu_all = jnp.dot(xemb_ref[...].astype(jnp.bfloat16), wu_ref[...],
                     preferred_element_type=jnp.float32) + bg_ref[...]   # [S*B, 4H] f32
    for si in range(S):                                   # static, 8-row-aligned stores
        xu_ref[si] = xu_all[si * B:(si + 1) * B, :]

    # Invariant loads / constants hoisted out of the recurrence.
    wv = wv_ref[...]                                      # [4H,4H] bf16; rows [H,4H) are zero
    lane = lax.broadcasted_iota(jnp.int32, (B, H4), 1)
    is_g = jnp.logical_and(lane >= H, lane < 2 * H)       # cell-candidate lanes (pre-scaled x2)
    g_scale = jnp.where(is_g, 2.0, 1.0).astype(jnp.float32)
    g_shift = jnp.where(is_g, -1.0, 0.0).astype(jnp.float32)

    def step(t, carry):
        # Full-width carries; only lanes [0,H) hold real state. Junk lanes are bounded
        # (gates in (-1,1)) and only ever multiply zero weight rows -> never contaminate.
        c_full, h_full = carry                            # f32 [B, 4H]
        xu_t = xu_ref[t]                                  # [B, 4H] precomputed x_t@U + b
        # Single K=128 MXU pass per step: h @ Wv (bf16 in, f32 acc) + hoisted x-term.
        gates = jnp.dot(h_full.astype(jnp.bfloat16), wv,
                        preferred_element_type=jnp.float32) + xu_t
        # ONE sigmoid pass; tanh(z) == 2*sigmoid(2z) - 1 (g lanes pre-scaled by 2).
        s = jax.nn.sigmoid(gates)
        act = s * g_scale + g_shift                       # lanes: f | g | o | i
        r2 = pltpu.roll(act, shift=2 * H, axis=1)         # lanes: o | i | f | g
        fc = act * c_full                                 # lanes [0,H):   f * c
        ig = act * r2                                     # lanes [3H,4H): i * g
        c_new = fc + pltpu.roll(ig, shift=H, axis=1)      # lanes [0,H):   f*c + i*g
        h_new = r2 * jnp.tanh(c_new)                      # lanes [0,H):   o * tanh(c)
        return (c_new, h_new)

    c_fin, h_fin = lax.fori_loop(0, S, step, (c0_ref[...], h0_ref[...]),
                                 unroll=True)
    del c_fin

    # Lane-dense padded output projection (rows [H,4H) and cols [C,128) of wout are 0).
    out_ref[...] = (jnp.dot(h_fin.astype(jnp.bfloat16), wout_ref[...],
                            preferred_element_type=jnp.float32) + bout_ref[...])


def text_lstm_forward(X, h0, c0, params):
    """X: [batch, seq] int token ids; h0/c0: [batch, hidden]; params: raw per-gate weights."""
    (emb, u_i, u_f, u_c, u_o, v_i, v_f, v_c, v_o,
     b_i, b_f, b_c, b_o, w_out, b_out) = params
    B, S = X.shape
    E = emb.shape[1]
    H = h0.shape[-1]
    C = w_out.shape[-1]
    C_pad = ((C + 127) // 128) * 128

    # ---- one-time weight prep (gate column order f|g|o|i; g pre-scaled by 2) ----
    u_cat = jnp.concatenate([u_f, 2.0 * u_c, u_o, u_i], axis=1)          # [E, 4H]
    v_cat = jnp.concatenate([v_f, 2.0 * v_c, v_o, v_i], axis=1)          # [H, 4H]
    bgate = jnp.concatenate([b_f, 2.0 * b_c, b_o, b_i])[None, :].astype(jnp.float32)
    wu = u_cat.astype(jnp.bfloat16)                                      # [E, 4H]
    wv_pad = jnp.concatenate(
        [v_cat, jnp.zeros((3 * H, 4 * H), jnp.float32)], axis=0
    ).astype(jnp.bfloat16)                                               # [4H, 4H]
    wout_pad = (jnp.zeros((4 * H, C_pad), jnp.float32)
                .at[:H, :C].set(w_out)).astype(jnp.bfloat16)             # [4H, C_pad]
    bout_pad = jnp.zeros((1, C_pad), jnp.float32).at[:, :C].set(b_out[None, :])

    # ---- input / state layout prep (embedding gather only; x@U happens in-kernel) ----
    x_flat = jnp.transpose(jnp.take(emb, X, axis=0), (1, 0, 2)) \
                .reshape(S * B, E).astype(jnp.float32)                   # row t*B+b = (b, t)
    pad = jnp.zeros((B, 3 * H), jnp.float32)
    h0f = jnp.concatenate([h0.astype(jnp.float32), pad], axis=-1)        # [B, 4H]
    c0f = jnp.concatenate([c0.astype(jnp.float32), pad], axis=-1)        # [B, 4H]

    vmem = lambda: pl.BlockSpec(memory_space=pltpu.MemorySpace.VMEM)
    logits_pad = pl.pallas_call(
        _lstm_kernel,
        out_shape=jax.ShapeDtypeStruct((B, C_pad), jnp.float32),
        in_specs=[vmem() for _ in range(8)],
        out_specs=vmem(),
        scratch_shapes=[pltpu.VMEM((S, B, 4 * H), jnp.float32)],
    )(x_flat, h0f, c0f, wu, bgate, wv_pad, wout_pad, bout_pad)
    return logits_pad[:, :C]


def reference_forward(X, h0, c0, params):
    """Pure-JAX f32 reference matching the PyTorch forward semantics exactly."""
    (emb, u_i, u_f, u_c, u_o, v_i, v_f, v_c, v_o,
     b_i, b_f, b_c, b_o, w_out, b_out) = params
    x = jnp.take(emb, X, axis=0)           # [B, S, E]
    x = jnp.transpose(x, (1, 0, 2))        # [S, B, E]
    h, c = h0, c0
    for t in range(x.shape[0]):
        xt = x[t]
        i_t = jax.nn.sigmoid(xt @ u_i + h @ v_i + b_i)
        f_t = jax.nn.sigmoid(xt @ u_f + h @ v_f + b_f)
        g_t = jnp.tanh(xt @ u_c + h @ v_c + b_c)
        o_t = jax.nn.sigmoid(xt @ u_o + h @ v_o + b_o)
        c = f_t * c + i_t * g_t
        h = o_t * jnp.tanh(c)
    return h @ w_out + b_out


if __name__ == "__main__":
    key = jax.random.PRNGKey(0)
    ks = jax.random.split(key, 16)

    # --- deterministic parameter init (shapes per the module __init__) ---
    emb = jax.random.normal(ks[0], (N_CLASS, EMB_SIZE), jnp.float32) * 0.1
    u_i = jax.random.normal(ks[1], (EMB_SIZE, N_HIDDEN), jnp.float32) * 0.1
    u_f = jax.random.normal(ks[2], (EMB_SIZE, N_HIDDEN), jnp.float32) * 0.1
    u_c = jax.random.normal(ks[3], (EMB_SIZE, N_HIDDEN), jnp.float32) * 0.1
    u_o = jax.random.normal(ks[4], (EMB_SIZE, N_HIDDEN), jnp.float32) * 0.1
    v_i = jax.random.normal(ks[5], (N_HIDDEN, N_HIDDEN), jnp.float32) * 0.1
    v_f = jax.random.normal(ks[6], (N_HIDDEN, N_HIDDEN), jnp.float32) * 0.1
    v_c = jax.random.normal(ks[7], (N_HIDDEN, N_HIDDEN), jnp.float32) * 0.1
    v_o = jax.random.normal(ks[8], (N_HIDDEN, N_HIDDEN), jnp.float32) * 0.1
    b_i = jax.random.normal(ks[9], (N_HIDDEN,), jnp.float32) * 0.1
    b_f = jax.random.normal(ks[10], (N_HIDDEN,), jnp.float32) * 0.05
    b_c = jax.random.normal(ks[11], (N_HIDDEN,), jnp.float32) * 0.02
    b_o = jax.random.normal(ks[12], (N_HIDDEN,), jnp.float32) * 0.01
    w_out = jax.random.normal(ks[13], (N_HIDDEN, N_CLASS), jnp.float32) * 0.1
    b_out = jnp.ones((N_CLASS,), jnp.float32)      # self.b = torch.ones([n_class])

    params = (emb, u_i, u_f, u_c, u_o, v_i, v_f, v_c, v_o,
              b_i, b_f, b_c, b_o, w_out, b_out)

    # --- example inputs ---
    X = jax.random.randint(ks[14], (BATCH, SEQ), 0, N_CLASS, jnp.int32)
    h0 = jnp.zeros((BATCH, N_HIDDEN), jnp.float32)
    c0 = jnp.zeros((BATCH, N_HIDDEN), jnp.float32)

    fwd = jax.jit(text_lstm_forward)
    out = fwd(X, h0, c0, params)
    out = jax.block_until_ready(out)

    ref = reference_forward(X, h0, c0, params)
    assert out.shape == (BATCH, N_CLASS)
    # bf16 matmul operands -> loosen tolerance vs the f32 reference.
    assert jnp.allclose(out, ref, atol=2e-2, rtol=2e-2), "mismatch vs reference"

    print("KERNEL_OK")
</pallas_src>

<mosaic_0001>
module attributes {stable_mosaic.version = 11 : i64} {
  func.func @_lstm_kernel(%arg0: memref<40x16xf32, #tpu.memory_space<vmem>>, %arg1: memref<8x128xf32, #tpu.memory_space<vmem>>, %arg2: memref<8x128xf32, #tpu.memory_space<vmem>>, %arg3: memref<16x128xbf16, #tpu.memory_space<vmem>>, %arg4: memref<1x128xf32, #tpu.memory_space<vmem>>, %arg5: memref<128x128xbf16, #tpu.memory_space<vmem>>, %arg6: memref<128x128xbf16, #tpu.memory_space<vmem>>, %arg7: memref<1x128xf32, #tpu.memory_space<vmem>>, %arg8: memref<8x128xf32, #tpu.memory_space<vmem>>, %arg9: memref<5x8x128xf32, #tpu.memory_space<vmem>>) attributes {dimension_semantics = [], scalar_prefetch = 0 : i64, scratch_operands = 1 : i64, tpu.core_type = #tpu.core_type<tc>} {
    %c0 = arith.constant 0 : index
    %c0_0 = arith.constant 0 : index
    %0 = vector.load %arg0[%c0, %c0_0] : memref<40x16xf32, #tpu.memory_space<vmem>>, vector<40x16xf32>
    %1 = arith.truncf %0 : vector<40x16xf32> to vector<40x16xbf16>
    %c0_1 = arith.constant 0 : index
    %c0_2 = arith.constant 0 : index
    %2 = vector.load %arg3[%c0_1, %c0_2] : memref<16x128xbf16, #tpu.memory_space<vmem>>, vector<16x128xbf16>
    %cst = arith.constant dense<0.000000e+00> : vector<40x128xf32>
    %3 = tpu.matmul %1, %2, %cst {dimension_numbers = #tpu.dot_dimension_numbers<[1], [0], [0], [1], [0, 0, 1, 1], [], []>} : vector<40x16xbf16>, vector<16x128xbf16>, vector<40x128xf32> -> vector<40x128xf32>
    %c0_3 = arith.constant 0 : index
    %c0_4 = arith.constant 0 : index
    %4 = vector.load %arg4[%c0_3, %c0_4] : memref<1x128xf32, #tpu.memory_space<vmem>>, vector<1x128xf32>
    %5 = vector.broadcast %4 : vector<1x128xf32> to vector<40x128xf32>
    %6 = arith.addf %3, %5 : vector<40x128xf32>
    %7 = vector.extract_strided_slice %6 {offsets = [0, 0], sizes = [8, 128], strides = [1, 1]} : vector<40x128xf32> to vector<8x128xf32>
    %c0_5 = arith.constant 0 : index
    %c0_6 = arith.constant 0 : index
    %c0_7 = arith.constant 0 : index
    %8 = vector.load %arg9[%c0_5, %c0_6, %c0_7] : memref<5x8x128xf32, #tpu.memory_space<vmem>>, vector<1x8x128xf32>
    %9 = vector.shape_cast %8 : vector<1x8x128xf32> to vector<8x128xf32>
    %10 = vector.shape_cast %7 : vector<8x128xf32> to vector<1x8x128xf32>
    tpu.vector_store %arg9[%c0_5, %c0_6, %c0_7], %10 {strides = array<i32>} : memref<5x8x128xf32, #tpu.memory_space<vmem>>, vector<1x8x128xf32>,
    %11 = vector.extract_strided_slice %6 {offsets = [8, 0], sizes = [8, 128], strides = [1, 1]} : vector<40x128xf32> to vector<8x128xf32>
    %c1 = arith.constant 1 : index
    %c0_8 = arith.constant 0 : index
    %c0_9 = arith.constant 0 : index
    %12 = vector.load %arg9[%c1, %c0_8, %c0_9] : memref<5x8x128xf32, #tpu.memory_space<vmem>>, vector<1x8x128xf32>
    %13 = vector.shape_cast %12 : vector<1x8x128xf32> to vector<8x128xf32>
    %14 = vector.shape_cast %11 : vector<8x128xf32> to vector<1x8x128xf32>
    tpu.vector_store %arg9[%c1, %c0_8, %c0_9], %14 {strides = array<i32>} : memref<5x8x128xf32, #tpu.memory_space<vmem>>, vector<1x8x128xf32>,
    %15 = vector.extract_strided_slice %6 {offsets = [16, 0], sizes = [8, 128], strides = [1, 1]} : vector<40x128xf32> to vector<8x128xf32>
    %c2 = arith.constant 2 : index
    %c0_10 = arith.constant 0 : index
    %c0_11 = arith.constant 0 : index
    %16 = vector.load %arg9[%c2, %c0_10, %c0_11] : memref<5x8x128xf32, #tpu.memory_space<vmem>>, vector<1x8x128xf32>
    %17 = vector.shape_cast %16 : vector<1x8x128xf32> to vector<8x128xf32>
    %18 = vector.shape_cast %15 : vector<8x128xf32> to vector<1x8x128xf32>
    tpu.vector_store %arg9[%c2, %c0_10, %c0_11], %18 {strides = array<i32>} : memref<5x8x128xf32, #tpu.memory_space<vmem>>, vector<1x8x128xf32>,
    %19 = vector.extract_strided_slice %6 {offsets = [24, 0], sizes = [8, 128], strides = [1, 1]} : vector<40x128xf32> to vector<8x128xf32>
    %c3 = arith.constant 3 : index
    %c0_12 = arith.constant 0 : index
    %c0_13 = arith.constant 0 : index
    %20 = vector.load %arg9[%c3, %c0_12, %c0_13] : memref<5x8x128xf32, #tpu.memory_space<vmem>>, vector<1x8x128xf32>
    %21 = vector.shape_cast %20 : vector<1x8x128xf32> to vector<8x128xf32>
    %22 = vector.shape_cast %19 : vector<8x128xf32> to vector<1x8x128xf32>
    tpu.vector_store %arg9[%c3, %c0_12, %c0_13], %22 {strides = array<i32>} : memref<5x8x128xf32, #tpu.memory_space<vmem>>, vector<1x8x128xf32>,
    %23 = vector.extract_strided_slice %6 {offsets = [32, 0], sizes = [8, 128], strides = [1, 1]} : vector<40x128xf32> to vector<8x128xf32>
    %c4 = arith.constant 4 : index
    %c0_14 = arith.constant 0 : index
    %c0_15 = arith.constant 0 : index
    %24 = vector.load %arg9[%c4, %c0_14, %c0_15] : memref<5x8x128xf32, #tpu.memory_space<vmem>>, vector<1x8x128xf32>
    %25 = vector.shape_cast %24 : vector<1x8x128xf32> to vector<8x128xf32>
    %26 = vector.shape_cast %23 : vector<8x128xf32> to vector<1x8x128xf32>
    tpu.vector_store %arg9[%c4, %c0_14, %c0_15], %26 {strides = array<i32>} : memref<5x8x128xf32, #tpu.memory_space<vmem>>, vector<1x8x128xf32>,
    %c0_16 = arith.constant 0 : index
    %c0_17 = arith.constant 0 : index
    %27 = vector.load %arg5[%c0_16, %c0_17] : memref<128x128xbf16, #tpu.memory_space<vmem>>, vector<128x128xbf16>
    %28 = tpu.iota {dimensions = array<i32: 1>} : vector<8x128xi32>
    %c32_i32 = arith.constant 32 : i32
    %29 = vector.broadcast %c32_i32 : i32 to vector<8x128xi32>
    %30 = arith.cmpi sge, %28, %29 : vector<8x128xi32>
    %c64_i32 = arith.constant 64 : i32
    %31 = vector.broadcast %c64_i32 : i32 to vector<8x128xi32>
    %32 = arith.cmpi slt, %28, %31 : vector<8x128xi32>
    %33 = arith.andi %30, %32 : vector<8x128xi1>
    %cst_18 = arith.constant 2.000000e+00 : f32
    %cst_19 = arith.constant 1.000000e+00 : f32
    %34 = vector.broadcast %cst_18 : f32 to vector<8x128xf32>
    %35 = vector.broadcast %cst_19 : f32 to vector<8x128xf32>
    %36 = arith.select %33, %34, %35 : vector<8x128xi1>, vector<8x128xf32>
    %cst_20 = arith.constant -1.000000e+00 : f32
    %cst_21 = arith.constant 0.000000e+00 : f32
    %37 = vector.broadcast %cst_20 : f32 to vector<8x128xf32>
    %38 = vector.broadcast %cst_21 : f32 to vector<8x128xf32>
    %39 = arith.select %33, %37, %38 : vector<8x128xi1>, vector<8x128xf32>
    %c0_22 = arith.constant 0 : index
    %c0_23 = arith.constant 0 : index
    %40 = vector.load %arg2[%c0_22, %c0_23] : memref<8x128xf32, #tpu.memory_space<vmem>>, vector<8x128xf32>
    %c0_24 = arith.constant 0 : index
    %c0_25 = arith.constant 0 : index
    %41 = vector.load %arg1[%c0_24, %c0_25] : memref<8x128xf32, #tpu.memory_space<vmem>>, vector<8x128xf32>
    %c0_i32 = arith.constant 0 : i32
    %42 = arith.index_cast %c0_i32 : i32 to index
    %c0_26 = arith.constant 0 : index
    %c0_27 = arith.constant 0 : index
    %43 = vector.load %arg9[%42, %c0_26, %c0_27] : memref<5x8x128xf32, #tpu.memory_space<vmem>>, vector<1x8x128xf32>
    %44 = vector.shape_cast %43 : vector<1x8x128xf32> to vector<8x128xf32>
    %45 = arith.truncf %41 : vector<8x128xf32> to vector<8x128xbf16>
    %cst_28 = arith.constant dense<0.000000e+00> : vector<8x128xf32>
    %46 = tpu.matmul %45, %27, %cst_28 {dimension_numbers = #tpu.dot_dimension_numbers<[1], [0], [0], [1], [0, 0, 1, 1], [], []>} : vector<8x128xbf16>, vector<128x128xbf16>, vector<8x128xf32> -> vector<8x128xf32>
    %47 = arith.addf %46, %44 : vector<8x128xf32>
    %48 = arith.negf %47 : vector<8x128xf32>
    %49 = math.exp %48 : vector<8x128xf32>
    %cst_29 = arith.constant 1.000000e+00 : f32
    %50 = vector.broadcast %cst_29 : f32 to vector<8x128xf32>
    %51 = arith.addf %50, %49 : vector<8x128xf32>
    %52 = arith.divf %50, %51 : vector<8x128xf32>
    %53 = arith.mulf %52, %36 : vector<8x128xf32>
    %54 = arith.addf %53, %39 : vector<8x128xf32>
    %c64_i32_30 = arith.constant 64 : i32
    %55 = tpu.dynamic_rotate %54 by %c64_i32_30 dim 1 : vector<8x128xf32>, i32 -> vector<8x128xf32>
    %56 = arith.mulf %54, %40 : vector<8x128xf32>
    %57 = arith.mulf %54, %55 : vector<8x128xf32>
    %c32_i32_31 = arith.constant 32 : i32
    %58 = tpu.dynamic_rotate %57 by %c32_i32_31 dim 1 : vector<8x128xf32>, i32 -> vector<8x128xf32>
    %59 = arith.addf %56, %58 : vector<8x128xf32>
    %60 = math.tanh %59 : vector<8x128xf32>
    %61 = arith.mulf %55, %60 : vector<8x128xf32>
    %c1_i32 = arith.constant 1 : i32
    %62 = arith.index_cast %c1_i32 : i32 to index
    %c0_32 = arith.constant 0 : index
    %c0_33 = arith.constant 0 : index
    %63 = vector.load %arg9[%62, %c0_32, %c0_33] : memref<5x8x128xf32, #tpu.memory_space<vmem>>, vector<1x8x128xf32>
    %64 = vector.shape_cast %63 : vector<1x8x128xf32> to vector<8x128xf32>
    %65 = arith.truncf %61 : vector<8x128xf32> to vector<8x128xbf16>
    %cst_34 = arith.constant dense<0.000000e+00> : vector<8x128xf32>
    %66 = tpu.matmul %65, %27, %cst_34 {dimension_numbers = #tpu.dot_dimension_numbers<[1], [0], [0], [1], [0, 0, 1, 1], [], []>} : vector<8x128xbf16>, vector<128x128xbf16>, vector<8x128xf32> -> vector<8x128xf32>
    %67 = arith.addf %66, %64 : vector<8x128xf32>
    %68 = arith.negf %67 : vector<8x128xf32>
    %69 = math.exp %68 : vector<8x128xf32>
    %cst_35 = arith.constant 1.000000e+00 : f32
    %70 = vector.broadcast %cst_35 : f32 to vector<8x128xf32>
    %71 = arith.addf %70, %69 : vector<8x128xf32>
    %72 = arith.divf %70, %71 : vector<8x128xf32>
    %73 = arith.mulf %72, %36 : vector<8x128xf32>
    %74 = arith.addf %73, %39 : vector<8x128xf32>
    %c64_i32_36 = arith.constant 64 : i32
    %75 = tpu.dynamic_rotate %74 by %c64_i32_36 dim 1 : vector<8x128xf32>, i32 -> vector<8x128xf32>
    %76 = arith.mulf %74, %59 : vector<8x128xf32>
    %77 = arith.mulf %74, %75 : vector<8x128xf32>
    %c32_i32_37 = arith.constant 32 : i32
    %78 = tpu.dynamic_rotate %77 by %c32_i32_37 dim 1 : vector<8x128xf32>, i32 -> vector<8x128xf32>
    %79 = arith.addf %76, %78 : vector<8x128xf32>
    %80 = math.tanh %79 : vector<8x128xf32>
    %81 = arith.mulf %75, %80 : vector<8x128xf32>
    %c2_i32 = arith.constant 2 : i32
    %82 = arith.index_cast %c2_i32 : i32 to index
    %c0_38 = arith.constant 0 : index
    %c0_39 = arith.constant 0 : index
    %83 = vector.load %arg9[%82, %c0_38, %c0_39] : memref<5x8x128xf32, #tpu.memory_space<vmem>>, vector<1x8x128xf32>
    %84 = vector.shape_cast %83 : vector<1x8x128xf32> to vector<8x128xf32>
    %85 = arith.truncf %81 : vector<8x128xf32> to vector<8x128xbf16>
    %cst_40 = arith.constant dense<0.000000e+00> : vector<8x128xf32>
    %86 = tpu.matmul %85, %27, %cst_40 {dimension_numbers = #tpu.dot_dimension_numbers<[1], [0], [0], [1], [0, 0, 1, 1], [], []>} : vector<8x128xbf16>, vector<128x128xbf16>, vector<8x128xf32> -> vector<8x128xf32>
    %87 = arith.addf %86, %84 : vector<8x128xf32>
    %88 = arith.negf %87 : vector<8x128xf32>
    %89 = math.exp %88 : vector<8x128xf32>
    %cst_41 = arith.constant 1.000000e+00 : f32
    %90 = vector.broadcast %cst_41 : f32 to vector<8x128xf32>
    %91 = arith.addf %90, %89 : vector<8x128xf32>
    %92 = arith.divf %90, %91 : vector<8x128xf32>
    %93 = arith.mulf %92, %36 : vector<8x128xf32>
    %94 = arith.addf %93, %39 : vector<8x128xf32>
    %c64_i32_42 = arith.constant 64 : i32
    %95 = tpu.dynamic_rotate %94 by %c64_i32_42 dim 1 : vector<8x128xf32>, i32 -> vector<8x128xf32>
    %96 = arith.mulf %94, %79 : vector<8x128xf32>
    %97 = arith.mulf %94, %95 : vector<8x128xf32>
    %c32_i32_43 = arith.constant 32 : i32
    %98 = tpu.dynamic_rotate %97 by %c32_i32_43 dim 1 : vector<8x128xf32>, i32 -> vector<8x128xf32>
    %99 = arith.addf %96, %98 : vector<8x128xf32>
    %100 = math.tanh %99 : vector<8x128xf32>
    %101 = arith.mulf %95, %100 : vector<8x128xf32>
    %c3_i32 = arith.constant 3 : i32
    %102 = arith.index_cast %c3_i32 : i32 to index
    %c0_44 = arith.constant 0 : index
    %c0_45 = arith.constant 0 : index
    %103 = vector.load %arg9[%102, %c0_44, %c0_45] : memref<5x8x128xf32, #tpu.memory_space<vmem>>, vector<1x8x128xf32>
    %104 = vector.shape_cast %103 : vector<1x8x128xf32> to vector<8x128xf32>
    %105 = arith.truncf %101 : vector<8x128xf32> to vector<8x128xbf16>
    %cst_46 = arith.constant dense<0.000000e+00> : vector<8x128xf32>
    %106 = tpu.matmul %105, %27, %cst_46 {dimension_numbers = #tpu.dot_dimension_numbers<[1], [0], [0], [1], [0, 0, 1, 1], [], []>} : vector<8x128xbf16>, vector<128x128xbf16>, vector<8x128xf32> -> vector<8x128xf32>
    %107 = arith.addf %106, %104 : vector<8x128xf32>
    %108 = arith.negf %107 : vector<8x128xf32>
    %109 = math.exp %108 : vector<8x128xf32>
    %cst_47 = arith.constant 1.000000e+00 : f32
    %110 = vector.broadcast %cst_47 : f32 to vector<8x128xf32>
    %111 = arith.addf %110, %109 : vector<8x128xf32>
    %112 = arith.divf %110, %111 : vector<8x128xf32>
    %113 = arith.mulf %112, %36 : vector<8x128xf32>
    %114 = arith.addf %113, %39 : vector<8x128xf32>
    %c64_i32_48 = arith.constant 64 : i32
    %115 = tpu.dynamic_rotate %114 by %c64_i32_48 dim 1 : vector<8x128xf32>, i32 -> vector<8x128xf32>
    %116 = arith.mulf %114, %99 : vector<8x128xf32>
    %117 = arith.mulf %114, %115 : vector<8x128xf32>
    %c32_i32_49 = arith.constant 32 : i32
    %118 = tpu.dynamic_rotate %117 by %c32_i32_49 dim 1 : vector<8x128xf32>, i32 -> vector<8x128xf32>
    %119 = arith.addf %116, %118 : vector<8x128xf32>
    %120 = math.tanh %119 : vector<8x128xf32>
    %121 = arith.mulf %115, %120 : vector<8x128xf32>
    %c4_i32 = arith.constant 4 : i32
    %122 = arith.index_cast %c4_i32 : i32 to index
    %c0_50 = arith.constant 0 : index
    %c0_51 = arith.constant 0 : index
    %123 = vector.load %arg9[%122, %c0_50, %c0_51] : memref<5x8x128xf32, #tpu.memory_space<vmem>>, vector<1x8x128xf32>
    %124 = vector.shape_cast %123 : vector<1x8x128xf32> to vector<8x128xf32>
    %125 = arith.truncf %121 : vector<8x128xf32> to vector<8x128xbf16>
    %cst_52 = arith.constant dense<0.000000e+00> : vector<8x128xf32>
    %126 = tpu.matmul %125, %27, %cst_52 {dimension_numbers = #tpu.dot_dimension_numbers<[1], [0], [0], [1], [0, 0, 1, 1], [], []>} : vector<8x128xbf16>, vector<128x128xbf16>, vector<8x128xf32> -> vector<8x128xf32>
    %127 = arith.addf %126, %124 : vector<8x128xf32>
    %128 = arith.negf %127 : vector<8x128xf32>
    %129 = math.exp %128 : vector<8x128xf32>
    %cst_53 = arith.constant 1.000000e+00 : f32
    %130 = vector.broadcast %cst_53 : f32 to vector<8x128xf32>
    %131 = arith.addf %130, %129 : vector<8x128xf32>
    %132 = arith.divf %130, %131 : vector<8x128xf32>
    %133 = arith.mulf %132, %36 : vector<8x128xf32>
    %134 = arith.addf %133, %39 : vector<8x128xf32>
    %c64_i32_54 = arith.constant 64 : i32
    %135 = tpu.dynamic_rotate %134 by %c64_i32_54 dim 1 : vector<8x128xf32>, i32 -> vector<8x128xf32>
    %136 = arith.mulf %134, %119 : vector<8x128xf32>
    %137 = arith.mulf %134, %135 : vector<8x128xf32>
    %c32_i32_55 = arith.constant 32 : i32
    %138 = tpu.dynamic_rotate %137 by %c32_i32_55 dim 1 : vector<8x128xf32>, i32 -> vector<8x128xf32>
    %139 = arith.addf %136, %138 : vector<8x128xf32>
    %140 = math.tanh %139 : vector<8x128xf32>
    %141 = arith.mulf %135, %140 : vector<8x128xf32>
    %c5_i32 = arith.constant 5 : i32
    %142 = arith.truncf %141 : vector<8x128xf32> to vector<8x128xbf16>
    %c0_56 = arith.constant 0 : index
    %c0_57 = arith.constant 0 : index
    %143 = vector.load %arg6[%c0_56, %c0_57] : memref<128x128xbf16, #tpu.memory_space<vmem>>, vector<128x128xbf16>
    %cst_58 = arith.constant dense<0.000000e+00> : vector<8x128xf32>
    %144 = tpu.matmul %142, %143, %cst_58 {dimension_numbers = #tpu.dot_dimension_numbers<[1], [0], [0], [1], [0, 0, 1, 1], [], []>} : vector<8x128xbf16>, vector<128x128xbf16>, vector<8x128xf32> -> vector<8x128xf32>
    %c0_59 = arith.constant 0 : index
    %c0_60 = arith.constant 0 : index
    %145 = vector.load %arg7[%c0_59, %c0_60] : memref<1x128xf32, #tpu.memory_space<vmem>>, vector<1x128xf32>
    %146 = vector.broadcast %145 : vector<1x128xf32> to vector<8x128xf32>
    %147 = arith.addf %144, %146 : vector<8x128xf32>
    %c0_61 = arith.constant 0 : index
    %c0_62 = arith.constant 0 : index
    %148 = vector.load %arg8[%c0_61, %c0_62] : memref<8x128xf32, #tpu.memory_space<vmem>>, vector<8x128xf32>
    tpu.vector_store %arg8[%c0_61, %c0_62], %147 {strides = array<i32>} : memref<8x128xf32, #tpu.memory_space<vmem>>, vector<8x128xf32>,
    return
  }
}

</mosaic_0001>

<bundles_post_ra>
// kernel: text_lstm_forward.1
= control target key start
LH: loop header
LB: loop body
LE: loop exit
PB: predicated region body
PF: predicated region fallthrough
CT: control target
= control target key end

     0   :  { %v925_v1 = vmov 0.0   ;;  %vm926_vm0 = vmmov 0   ;;  %vm54_vm1 = vcmask 130048   ;;  %s1230_s0 = inlined_call_operand.vmem [shape: f32[40,16], index: 0, kind: input, shape index: {}]   ;;  %s1231_s1 = inlined_call_operand.vmem [shape: f32[8,128], index: 1, kind: input, shape index: {}]   ;;  %s1232_s2 = inlined_call_operand.vmem [shape: f32[8,128], index: 2, kind: input, shape index: {}]   ;;  %s1233_s3 = inlined_call_operand.vmem [shape: bf16[16,128], index: 3, kind: input, shape index: {}]   ;;  %s1234_s4 = inlined_call_operand.vmem [shape: f32[1,128], index: 4, kind: input, shape index: {}]   ;;  %s1235_s5 = inlined_call_operand.vmem [shape: bf16[128,128], index: 5, kind: input, shape index: {}]   ;;  %s1236_s6 = inlined_call_operand.vmem [shape: bf16[128,128], index: 6, kind: input, shape index: {}]   ;;  %s1237_s7 = inlined_call_operand.vmem [shape: f32[1,128], index: 7, kind: input, shape index: {}]   ;;  %s1238_s8 = inlined_call_operand.hbm [shape: f32[8,128], index: 8, kind: output, shape index: {}]  }
   0x1   :  { %v979_v0 = vld [vmem:[%s1235_s5] sm:$0xff]   ;;  %723 = vmatprep.subr.bf16.mxu1 %v925_v1  ;;  %709 = vmatprep.subr.bf16.mxu0 %v925_v1  ;;  %v987_v2 = vld [vmem:[%s1235_s5 + $0x8] sm:$0xff]   ;;  %v997_v3 = vld [vmem:[%s1235_s5 + $0x10] sm:$0xff]  }
   0x2   :  { %724 = vmatpush3.bf16.msra.mxu1 %v979_v0  ;;  %711 = vmatprep.mubr.msk.bf16.mxu0 %vm926_vm0, %v925_v1  ;;  %v860_v4 = vld [vmem:[%s1233_s3] sm:$0xff]   ;;  %v32_v6 = vld [vmem:[%s1230_s0 + $0x8] sm:$0xff]  ;;  %v1015_v8 = vld [vmem:[%s1235_s5 + $0x18] sm:$0xff]  }
   0x3   :  { %725 = vmatprep.subr.bf16.mxu1 %v925_v1  ;;  %739 = vmatprep.mubr.msk.bf16.mxu1 %vm926_vm0, %v925_v1  ;;  %v31_v5 = vld [vmem:[%s1230_s0] sm:$0xff] }
   0x4   :  { %710 = vmatpush3.bf16.msra.mxu0 %v860_v4  ;;  %v36_v7 = vpack.c.bf16 %v32_v6, %v31_v5  ;;  %v1022_v9 = vld [vmem:[%s1235_s5 + $0x20] sm:$0xff]  }
   0x5   :  { %743 = vmatprep.subr.bf16.mxu0 %v925_v1 }
   0x6   :  { %726 = vmatpush3.bf16.msra.mxu1 %v987_v2 }
   0x7   :  { %727 = vmatprep.subr.bf16.mxu1 %v925_v1  ;;  %712 = vmatmul.mubr.msk.bf16.vlgmr.msra.gmra.mrb[0].mxu0 %vm54_vm1, %v36_v7 }
   0x8   :  { %744 = vmatpush3.bf16.msra.mxu0 %v979_v0  ;;  %715 = vmatprep.mubr.msk.bf16.mxu0 %vm926_vm0, %v925_v1 }
   0x9   :  { %745 = vmatprep.subr.bf16.mxu0 %v925_v1 }
   0xa   :  { %728 = vmatpush3.bf16.msra.mxu1 %v997_v3 }
   0xb   :  { %729 = vmatprep.subr.bf16.mxu1 %v925_v1 }
   0xe   :  { %730 = vmatpush3.bf16.msra.mxu1 %v1015_v8 }
   0xf   :  { %731 = vmatprep.subr.bf16.mxu1 %v925_v1 }
  0x10   :  { %13 = vsyncpa [#allocation4], 0  ;;  %746 = vmatpush3.bf16.msra.mxu0 %v987_v2  ;;  %v1036_v10 = vld [vmem:[%s1235_s5 + $0x28] sm:$0xff]   ;;  %v1045_v11 = vld [vmem:[%s1235_s5 + $0x30] sm:$0xff]   ;;  %v145_v27 = vlaneseq  ;;  %v927_v34 = vmov 1.0   ;;  %s928_s9 = smov 64  }
  0x11   :  { %747 = vmatprep.subr.bf16.mxu0 %v925_v1  ;;  %v1054_v12 = vld [vmem:[%s1235_s5 + $0x38] sm:$0xff]   ;;  %v153_v13 = vld [vmem:[%s1231_s1] sm:$0xff]  ;;  %v33_v31 = vld [vmem:[%s1230_s0 + $0x10] sm:$0xff]  ;;  %s929_s12 = smov 32   ;;  %s930_s28 = smov [#allocation3]  }
  0x12   :  { %732 = vmatpush3.bf16.msra.mxu1 %v1022_v9  ;;  %v155_v14 = vpack.c.bf16 %v153_v13, %v153_v13  ;;  %v1093_v19 = vld [vmem:[%s1234_s4] ss:$0 sm:$0xff]  ;;  %v146_v30 = vand.u32 127, %v145_v27  ;;  %v34_v32 = vld [vmem:[%s1230_s0 + $0x18] sm:$0xff] }
  0x13   :  { %733 = vmatprep.subr.bf16.mxu1 %v925_v1  ;;  %v37_v33 = vpack.c.bf16 %v34_v32, %v33_v31  ;;  %v35_v40 = vld [vmem:[%s1230_s0 + $0x20] sm:$0xff] }
  0x14   :  { %748 = vmatpush3.bf16.msra.mxu0 %v997_v3  ;;  %vm147_vm2 = vcmp.ge.s32.totalorder %v146_v30, 32  ;;  %vm148_vm3 = vcmp.lt.s32.totalorder %v146_v30, 64  ;;  %v38_v41 = vpack.c.bf16 %v35_v40, %v35_v40  ;;  %v152_v48 = vld [vmem:[%s1232_s2] sm:$0xff] }
  0x15   :  { %749 = vmatprep.subr.bf16.mxu0 %v925_v1  ;;  %vm149_vm4 = vmand %vm147_vm2, %vm148_vm3  ;;  %716 = vmatmul.mubr.msk.bf16.gmra.mrb[4].mxu0 %vm54_vm1, %v37_v33 }
  0x16   :  { %734 = vmatpush3.bf16.msra.mxu1 %v1036_v10  ;;  %v1103_v35 = vsel %vm149_vm4, 2.0, %v927_v34  ;;  %719 = vmatprep.mubr.msk.bf16.mxu0 %vm926_vm0, %v925_v1  ;;  %v1108_v37 = vsel %vm149_vm4, -1.0, %v925_v1 }
  0x17   :  { %735 = vmatprep.subr.bf16.mxu1 %v925_v1 }
  0x18   :  { %750 = vmatpush3.bf16.msra.mxu0 %v1015_v8 }
  0x19   :  { %751 = vmatprep.subr.bf16.mxu0 %v925_v1 }
  0x1a   :  { %736 = vmatpush3.bf16.msra.mxu1 %v1045_v11 }
  0x1b   :  { %737 = vmatprep.subr.bf16.mxu1 %v925_v1 }
  0x1c   :  { %752 = vmatpush3.bf16.msra.mxu0 %v1022_v9 }
  0x1d   :  { %753 = vmatprep.subr.bf16.mxu0 %v925_v1  ;;  %720 = vmatmul.mubr.msk.bf16.gmra.mrb[8].mxu0 %vm54_vm1, %v38_v41 }
  0x1e   :  { %738 = vmatpush3.bf16.msra.mxu1 %v1054_v12  ;;  %759 = vmatprep.mubr.msk.bf16.mxu0 %vm926_vm0, %v925_v1 }
  0x1f   :  { %763 = vmatprep.subr.bf16.mxu1 %v925_v1 }
  0x20   :  { %754 = vmatpush3.bf16.msra.mxu0 %v1036_v10 }
  0x21   :  { %740 = vmatmul.mubr.bf16.vlgmr.msra.gmra.mrb[0].mxu1 %v155_v14  ;;  %755 = vmatprep.subr.bf16.mxu0 %v925_v1 }
  0x22   :  { %764 = vmatpush3.bf16.msra.mxu1 %v979_v0  ;;  %779 = vmatprep.mubr.msk.bf16.mxu1 %vm926_vm0, %v925_v1 }
  0x23   :  { %765 = vmatprep.subr.bf16.mxu1 %v925_v1 }
  0x24   :  { %756 = vmatpush3.bf16.msra.mxu0 %v1045_v11 }
  0x25   :  { %757 = vmatprep.subr.bf16.mxu0 %v925_v1 }
  0x26   :  { %766 = vmatpush3.bf16.msra.mxu1 %v987_v2 }
  0x27   :  { %767 = vmatprep.subr.bf16.mxu1 %v925_v1 }
  0x28   :  { %758 = vmatpush3.bf16.msra.mxu0 %v1054_v12 }
  0x29   :  { %783 = vmatprep.subr.bf16.mxu0 %v925_v1 }
  0x2a   :  { %768 = vmatpush3.bf16.msra.mxu1 %v997_v3 }
  0x2b   :  { %769 = vmatprep.subr.bf16.mxu1 %v925_v1 }
  0x2e   :  { %770 = vmatpush3.bf16.msra.mxu1 %v1015_v8 }
  0x2f   :  { %771 = vmatprep.subr.bf16.mxu1 %v925_v1 }
  0x32   :  { %772 = vmatpush3.bf16.msra.mxu1 %v1022_v9 }
  0x33   :  { %773 = vmatprep.subr.bf16.mxu1 %v925_v1 }
  0x36   :  { %774 = vmatpush3.bf16.msra.mxu1 %v1036_v10 }
  0x37   :  { %775 = vmatprep.subr.bf16.mxu1 %v925_v1 }
  0x3a   :  { %776 = vmatpush3.bf16.msra.mxu1 %v1045_v11 }
  0x3b   :  { %777 = vmatprep.subr.bf16.mxu1 %v925_v1 }
  0x3e   :  { %778 = vmatpush3.bf16.msra.mxu1 %v1054_v12 }
  0x3f   :  { %823 = vmatprep.subr.bf16.mxu1 %v925_v1 }
  0xda   :  { %v98_v15 = vpop.f32.mrb[0].mxu0 }
  0xdb   :  { %v713_v16 = vpop.f32.mrb[1].mxu0  ;;  %v99_v20 = vadd.f32 %v1093_v19, %v98_v15 }
  0xdc   :  { %v1088_v17 = vpop.f32.mrb[2].mxu0 }
  0xdd   :  { %v714_v18 = vpop.f32.mrb[3].mxu0  ;;  %v102_v55 = vadd.f32 %v1093_v19, %v1088_v17 }
  0xe8   :  { %v106_v44 = vpop.f32.mrb[4].mxu0 }
  0xe9   :  { %v717_v45 = vpop.f32.mrb[5].mxu0 }
  0xea   :  { %v1120_v46 = vpop.f32.mrb[6].mxu0 }
  0xeb   :  { %v718_v47 = vpop.f32.mrb[7].mxu0 }
  0xf4   :  { %v238_v21 = vpop.f32.mrb[0].mxu1 }
  0xf5   :  { %v239_v22 = vadd.f32 %v238_v21, %v99_v20  ;;  %v741_v23 = vpop.f32.mrb[1].mxu1  ;;  %v107_v21 = vadd.f32 %v1093_v19, %v106_v44 }
  0xf6   :  { %v241_v24 = vpop.f32.mrb[2].mxu1 }
  0xf7   :  { %v637_v25 = vmul.f32 -1.442695, %v239_v22  ;;  %v742_v26 = vpop.f32.mrb[3].mxu1 }
  0xf9   :  { %871 = vpow2.f32 %v637_v25 }
 0x103   :  { %v872_v28 = vpop.eup %871 }
 0x104   :  { %v247_v29 = vadd.f32 1.0, %v872_v28 }
 0x106   :  { %873 = vrcp.f32 %v247_v29 }
 0x110   :  { %v874_v36 = vpop.eup %873 }
 0x111   :  { %v250_v38 = vmul.f32 %v874_v36, %v1103_v35 }
 0x113   :  { %v251_v39 = vadd.f32 %v250_v38, %v1108_v37 }
 0x115   :  { %252 = vrot.lane.b32.xlu0 %v251_v39, %s928_s9  ;;  %v254_v49 = vmul.f32 %v251_v39, %v152_v48 }
 0x187   :  { %v253_v42 = vpop.permute.xlu0 %252 }
 0x188   :  { %v255_v43 = vmul.f32 %v253_v42, %v251_v39 }
 0x18a   :  { %256 = vrot.lane.b32.xlu0 %v255_v43, %s929_s12 }
 0x1fc   :  { %v257_v50 = vpop.permute.xlu0 %256 }
 0x1fd   :  { %v258_v51 = vadd.f32 %v257_v50, %v254_v49 }
 0x1ff   :  { %875 = vtanh.f32 %v258_v51 }
 0x209   :  { %v876_v52 = vpop.eup %875 }
 0x20a   :  { %v260_v53 = vmul.f32 %v876_v52, %v253_v42 }
 0x20c   :  { %v262_v54 = vpack.c.bf16 %v260_v53, %v260_v53 }
 0x20e   :  { %760 = vmatmul.mubr.bf16.vlgmr.msra.gmra.mrb[12].mxu0 %v262_v54 }
 0x20f   :  { %784 = vmatpush3.bf16.msra.mxu0 %v979_v0  ;;  %799 = vmatprep.mubr.msk.bf16.mxu0 %vm926_vm0, %v925_v1 }
 0x210   :  { %785 = vmatprep.subr.bf16.mxu0 %v925_v1 }
 0x213   :  { %786 = vmatpush3.bf16.msra.mxu0 %v987_v2 }
 0x214   :  { %787 = vmatprep.subr.bf16.mxu0 %v925_v1 }
 0x217   :  { %788 = vmatpush3.bf16.msra.mxu0 %v997_v3 }
 0x218   :  { %789 = vmatprep.subr.bf16.mxu0 %v925_v1 }
 0x21b   :  { %790 = vmatpush3.bf16.msra.mxu0 %v1015_v8 }
 0x21c   :  { %791 = vmatprep.subr.bf16.mxu0 %v925_v1 }
 0x21f   :  { %792 = vmatpush3.bf16.msra.mxu0 %v1022_v9 }
 0x220   :  { %793 = vmatprep.subr.bf16.mxu0 %v925_v1 }
 0x223   :  { %794 = vmatpush3.bf16.msra.mxu0 %v1036_v10 }
 0x224   :  { %795 = vmatprep.subr.bf16.mxu0 %v925_v1 }
 0x227   :  { %796 = vmatpush3.bf16.msra.mxu0 %v1045_v11 }
 0x228   :  { %797 = vmatprep.subr.bf16.mxu0 %v925_v1 }
 0x22b   :  { %798 = vmatpush3.bf16.msra.mxu0 %v1054_v12 }
 0x22c   :  { %803 = vmatprep.subr.bf16.mxu0 %v925_v1 }
 0x2e1   :  { %v297_v56 = vpop.f32.mrb[12].mxu0 }
 0x2e2   :  { %v298_v57 = vadd.f32 %v297_v56, %v102_v55  ;;  %v761_v58 = vpop.f32.mrb[13].mxu0 }
 0x2e3   :  { %v300_v59 = vpop.f32.mrb[14].mxu0 }
 0x2e4   :  { %v638_v60 = vmul.f32 -1.442695, %v298_v57  ;;  %v762_v61 = vpop.f32.mrb[15].mxu0 }
 0x2e6   :  { %877 = vpow2.f32 %v638_v60 }
 0x2f0   :  { %v878_v62 = vpop.eup %877 }
 0x2f1   :  { %v306_v63 = vadd.f32 1.0, %v878_v62 }
 0x2f3   :  { %879 = vrcp.f32 %v306_v63  ;;  %v863_v63 = vld [vmem:[%s1236_s6] sm:$0xff]  }
 0x2fd   :  { %v880_v4 = vpop.eup %879 }
 0x2fe   :  { %v309_v5 = vmul.f32 %v880_v4, %v1103_v35  ;;  %v864_v4 = vld [vmem:[%s1236_s6 + $0x8] sm:$0xff]  }
 0x300   :  { %v310_v6 = vadd.f32 %v309_v5, %v1108_v37  ;;  %v865_v5 = vld [vmem:[%s1236_s6 + $0x10] sm:$0xff]  }
 0x302   :  { %311 = vrot.lane.b32.xlu1 %v310_v6, %s928_s9  ;;  %v313_v14 = vmul.f32 %v310_v6, %v258_v51 }
 0x374   :  { %v312_v7 = vpop.permute.xlu1 %311 }
 0x375   :  { %v314_v13 = vmul.f32 %v312_v7, %v310_v6 }
 0x377   :  { %315 = vrot.lane.b32.xlu1 %v314_v13, %s929_s12  ;;  %v866_v13 = vld [vmem:[%s1236_s6 + $0x18] sm:$0xff]  }
 0x3e9   :  { %v316_v15 = vpop.permute.xlu1 %315 }
 0x3ea   :  { %v317_v16 = vadd.f32 %v316_v15, %v313_v14  ;;  %v869_v14 = vld [vmem:[%s1236_s6 + $0x30] sm:$0xff]  }
 0x3ec   :  { %881 = vtanh.f32 %v317_v16 }
 0x3f6   :  { %v882_v17 = vpop.eup %881 }
 0x3f7   :  { %v319_v18 = vmul.f32 %v882_v17, %v312_v7 }
 0x3f9   :  { %v321_v20 = vpack.c.bf16 %v319_v18, %v319_v18 }
 0x3fb   :  { %780 = vmatmul.mubr.bf16.vlgmr.msra.gmra.mrb[4].mxu1 %v321_v20 }
 0x3fc   :  { %839 = vmatprep.mubr.msk.bf16.mxu1 %vm926_vm0, %v925_v1  ;;  %824 = vmatpush3.bf16.msra.mxu1 %v863_v63 }
 0x3fd   :  { %825 = vmatprep.subr.bf16.mxu1 %v925_v1 }
 0x400   :  { %826 = vmatpush3.bf16.msra.mxu1 %v864_v4 }
 0x401   :  { %827 = vmatprep.subr.bf16.mxu1 %v925_v1 }
 0x404   :  { %828 = vmatpush3.bf16.msra.mxu1 %v865_v5 }
 0x405   :  { %829 = vmatprep.subr.bf16.mxu1 %v925_v1 }
 0x408   :  { %830 = vmatpush3.bf16.msra.mxu1 %v866_v13 }
 0x409   :  { %831 = vmatprep.subr.bf16.mxu1 %v925_v1 }
 0x4ce   :  { %v356_v22 = vpop.f32.mrb[4].mxu1 }
 0x4cf   :  { %v357_v23 = vadd.f32 %v356_v22, %v107_v21  ;;  %v781_v24 = vpop.f32.mrb[5].mxu1 }
 0x4d0   :  { %v359_v25 = vpop.f32.mrb[6].mxu1 }
 0x4d1   :  { %v639_v26 = vmul.f32 -1.442695, %v357_v23  ;;  %v782_v27 = vpop.f32.mrb[7].mxu1  ;;  %v642_v25 = vld [vmem:[%s1237_s7] ss:$0 sm:$0xff] }
 0x4d3   :  { %883 = vpow2.f32 %v639_v26 }
 0x4dd   :  { %v884_v28 = vpop.eup %883 }
 0x4de   :  { %v365_v29 = vadd.f32 1.0, %v884_v28 }
 0x4e0   :  { %885 = vrcp.f32 %v365_v29 }
 0x4ea   :  { %v886_v30 = vpop.eup %885 }
 0x4eb   :  { %v368_v31 = vmul.f32 %v886_v30, %v1103_v35 }
 0x4ed   :  { %v369_v32 = vadd.f32 %v368_v31, %v1108_v37 }
 0x4ef   :  { %370 = vrot.lane.b32.xlu0 %v369_v32, %s928_s9  ;;  %v372_v36 = vmul.f32 %v369_v32, %v317_v16  ;;  %v870_v16 = vld [vmem:[%s1236_s6 + $0x38] sm:$0xff]  }
 0x561   :  { %v371_v33 = vpop.permute.xlu0 %370 }
 0x562   :  { %v373_v34 = vmul.f32 %v371_v33, %v369_v32 }
 0x564   :  { %374 = vrot.lane.b32.xlu1 %v373_v34, %s929_s12 }
 0x5d6   :  { %v375_v38 = vpop.permute.xlu1 %374 }
 0x5d7   :  { %v376_v39 = vadd.f32 %v375_v38, %v372_v36 }
 0x5d9   :  { %887 = vtanh.f32 %v376_v39 }
 0x5e3   :  { %v888_v40 = vpop.eup %887 }
 0x5e4   :  { %v378_v41 = vmul.f32 %v888_v40, %v371_v33 }
 0x5e6   :  { %v380_v42 = vpack.c.bf16 %v378_v41, %v378_v41 }
 0x5e8   :  { %800 = vmatmul.mubr.bf16.vlgmr.msra.gmra.mrb[16].mxu0 %v380_v42 }
 0x5e9   :  { %804 = vmatpush3.bf16.msra.mxu0 %v979_v0  ;;  %819 = vmatprep.mubr.msk.bf16.mxu0 %vm926_vm0, %v925_v1  ;;  %v110_v0 = vadd.f32 %v1093_v19, %v1120_v46 }
 0x5ea   :  { %805 = vmatprep.subr.bf16.mxu0 %v925_v1 }
 0x5ed   :  { %806 = vmatpush3.bf16.msra.mxu0 %v987_v2 }
 0x5ee   :  { %807 = vmatprep.subr.bf16.mxu0 %v925_v1 }
 0x5f1   :  { %808 = vmatpush3.bf16.msra.mxu0 %v997_v3 }
 0x5f2   :  { %809 = vmatprep.subr.bf16.mxu0 %v925_v1 }
 0x5f5   :  { %810 = vmatpush3.bf16.msra.mxu0 %v1015_v8 }
 0x5f6   :  { %811 = vmatprep.subr.bf16.mxu0 %v925_v1 }
 0x5f9   :  { %812 = vmatpush3.bf16.msra.mxu0 %v1022_v9 }
 0x5fa   :  { %813 = vmatprep.subr.bf16.mxu0 %v925_v1 }
 0x5fd   :  { %814 = vmatpush3.bf16.msra.mxu0 %v1036_v10 }
 0x5fe   :  { %815 = vmatprep.subr.bf16.mxu0 %v925_v1 }
 0x601   :  { %816 = vmatpush3.bf16.msra.mxu0 %v1045_v11 }
 0x602   :  { %817 = vmatprep.subr.bf16.mxu0 %v925_v1 }
 0x605   :  { %818 = vmatpush3.bf16.msra.mxu0 %v1054_v12 }
 0x6bb   :  { %v415_v2 = vpop.f32.mrb[16].mxu0 }
 0x6bc   :  { %v416_v3 = vadd.f32 %v415_v2, %v110_v0  ;;  %v801_v8 = vpop.f32.mrb[17].mxu0 }
 0x6bd   :  { %v418_v43 = vpop.f32.mrb[18].mxu0 }
 0x6be   :  { %v640_v9 = vmul.f32 -1.442695, %v416_v3  ;;  %v802_v44 = vpop.f32.mrb[19].mxu0 }
 0x6c0   :  { %889 = vpow2.f32 %v640_v9 }
 0x6ca   :  { %v890_v45 = vpop.eup %889 }
 0x6cb   :  { %v424_v10 = vadd.f32 1.0, %v890_v45 }
 0x6cd   :  { %891 = vrcp.f32 %v424_v10 }
 0x6d7   :  { %v892_v47 = vpop.eup %891 }
 0x6d8   :  { %v427_v11 = vmul.f32 %v892_v47, %v1103_v35 }
 0x6da   :  { %v428_v48 = vadd.f32 %v427_v11, %v1108_v37 }
 0x6dc   :  { %429 = vrot.lane.b32.xlu0 %v428_v48, %s928_s9  ;;  %v431_v46 = vmul.f32 %v428_v48, %v376_v39 }
 0x74e   :  { %v430_v12 = vpop.permute.xlu0 %429 }
 0x74f   :  { %v432_v49 = vmul.f32 %v430_v12, %v428_v48 }
 0x751   :  { %433 = vrot.lane.b32.xlu1 %v432_v49, %s929_s12 }
 0x7c3   :  { %v434_v50 = vpop.permute.xlu1 %433 }
 0x7c4   :  { %v435_v51 = vadd.f32 %v434_v50, %v431_v46 }
 0x7c6   :  { %893 = vtanh.f32 %v435_v51 }
 0x7d0   :  { %v894_v52 = vpop.eup %893 }
 0x7d1   :  { %v437_v53 = vmul.f32 %v894_v52, %v430_v12 }
 0x7d3   :  { %v439_v54 = vpack.c.bf16 %v437_v53, %v437_v53 }
 0x7d5   :  { %820 = vmatmul.mubr.bf16.vlgmr.msra.gmra.mrb[8].mxu0 %v439_v54 }
 0x8a8   :  { %v474_v55 = vpop.f32.mrb[8].mxu0 }
 0x8a9   :  { %v843_v56 = vadd.f32 %v1093_v19, %v474_v55  ;;  %v821_v57 = vpop.f32.mrb[9].mxu0 }
 0x8aa   :  { %v477_v58 = vpop.f32.mrb[10].mxu0 }
 0x8ab   :  { %v641_v59 = vmul.f32 -1.442695, %v843_v56  ;;  %v822_v60 = vpop.f32.mrb[11].mxu0 }
 0x8ad   :  { %895 = vpow2.f32 %v641_v59 }
 0x8b7   :  { %v896_v61 = vpop.eup %895 }
 0x8b8   :  { %v483_v62 = vadd.f32 1.0, %v896_v61 }
 0x8ba   :  { %897 = vrcp.f32 %v483_v62 }
 0x8c4   :  { %v898_v19 = vpop.eup %897 }
 0x8c5   :  { %v486_v6 = vmul.f32 %v898_v19, %v1103_v35  ;;  %v867_v35 = vld [vmem:[%s1236_s6 + $0x20] sm:$0xff]  }
 0x8c6   :  { %832 = vmatpush3.bf16.msra.mxu1 %v867_v35 }
 0x8c7   :  { %v487_v7 = vadd.f32 %v486_v6, %v1108_v37  ;;  %v868_v37 = vld [vmem:[%s1236_s6 + $0x28] sm:$0xff]   ;;  %833 = vmatprep.subr.bf16.mxu1 %v925_v1  ;;  %s616_s6 = sshll.u32 %s930_s28, 4  ;;  %s617_s6 = int_to_ptr.vmem [resolvable:$true] %s616_s6 }
 0x8c8   :  { %s901_s29 = scalar_lea.vmem %s617_s6, 128  ;;  %p906_p1 = scmp.lt.s32.totalorder %s617_s6, %s617_s6 }
 0x8c9   :  { %488 = vrot.lane.b32.xlu0 %v487_v7, %s928_s9  ;;  %v490_v18 = vmul.f32 %v487_v7, %v435_v51  ;;  %p902_p0 = scmp.ne.s32.totalorder %s617_s6, %s901_s29  ;;  %p907_p2 = scmp.lt.s32.totalorder %s901_s29, %s901_s29 }
 0x8ca   :  { %834 = vmatpush3.bf16.msra.mxu1 %v868_v37 }
 0x8cb   :  { %835 = vmatprep.subr.bf16.mxu1 %v925_v1  ;;  %p908_p3 = por %p907_p2, %p906_p1 }
 0x8cd   :  { %p909_p4 = pnand %p908_p3, %p902_p0 }
 0x8ce   :  { %836 = vmatpush3.bf16.msra.mxu1 %v869_v14 }
 0x8cf   :  { %837 = vmatprep.subr.bf16.mxu1 %v925_v1 }
 0x8d2   :  { %838 = vmatpush3.bf16.msra.mxu1 %v870_v16 }
 0x93b   :  { %v489_v15 = vpop.permute.xlu0 %488 }
 0x93c   :  { %v491_v17 = vmul.f32 %v489_v15, %v487_v7 }
 0x93e   :  { %492 = vrot.lane.b32.xlu1 %v491_v17, %s929_s12 }
 0x9b0   :  { %v493_v20 = vpop.permute.xlu1 %492 }
 0x9b1   :  { %v494_v21 = vadd.f32 %v493_v20, %v490_v18 }
 0x9b3   :  { %899 = vtanh.f32 %v494_v21 }
 0x9bd   :  { %v900_v22 = vpop.eup %899 }
 0x9be   :  { %v496_v23 = vmul.f32 %v900_v22, %v489_v15 }
 0x9c0   :  { %v497_v24 = vpack.c.bf16 %v496_v23, %v496_v23 }
 0x9c2   :  { %840 = vmatmul.mubr.bf16.vlgmr.msra.gmra.mrb[8].mxu1 %v497_v24 }
 0xa95   :  { %v603_v26 = vpop.f32.mrb[8].mxu1 }
 0xa96   :  { %v604_v27 = vadd.f32 %v642_v25, %v603_v26  ;;  %v841_v1 = vpop.f32.mrb[9].mxu1 }
 0xa97   :  { %v606_v28 = vpop.f32.mrb[10].mxu1 }
 0xa98   :  { %609 = vst [vmem:[#allocation3] sm:$0xff] %v604_v27  ;;  %v842_v29 = vpop.f32.mrb[11].mxu1 }
 0xa99   :  { %912 = shalt.err (!%p909_p4)
}
 0xa9a   :  { %s913_s7 = scalar_lea.hbm %s1238_s8, 128 }
 0xa9b   :  { %p914_p5 = scmp.ne.s32.totalorder %s1238_s8, %s913_s7  ;;  %p917_p6 = scmp.lt.u32.totalorder %s913_s7, %s1238_s8 }
 0xa9d   :  { %p919_p7 = pnand %p917_p6, %p914_p5 }
 0xa9f   :  { %922 = shalt.err (!%p919_p7)
}
 0xaa0   :  { %619 = dma.vmem_to_hbm [thread:$0]  %s617_s6, 128, %s1238_s8, [#allocation4]  }
 0xaa1   :  { %923 = dma.done.wait [#allocation4], 128  }
 0xaa2   :  { %924 = vsyncadd [#allocation4], 4294967168 }
 0xaa3   :  { %623 = vsyncpa [#allocation4], 1 }

</bundles_post_ra>
